<compile_context>
chip_gen: v5e
topology: v5e:2x2
jax: 0.10.0
libtpu: 0.0.40
codegen_flags: <defaults>
</compile_context>

<pallas_src>
import jax
import jax.numpy as jnp
from jax.experimental import pallas as pl
from jax.experimental.pallas import tpu as pltpu


def _round_up(a, b):
    return (a + b - 1) // b * b


def _sublane(dtype):
    # 8 for f32, 16 for bf16, 32 for int8/fp8
    bits = jnp.dtype(dtype).itemsize * 8
    return max(8, 256 // bits)


def highway_kernel(x_ref, w_ref, b_ref, o_ref):
    x = x_ref[...]                                   # (TM, L_in), input dtype
    l_in = x.shape[-1]
    l_out = o_ref.shape[-1]

    # Single fused MXU pass: [proj | gate] columns, f32 accumulation.
    # Runs at default MXU precision; pass lax.Precision.HIGHEST here if bit-tight
    # f32 results vs a CPU/HIGHEST-precision reference are ever required.
    y = jnp.dot(x, w_ref[...], preferred_element_type=jnp.float32) + b_ref[...]

    # Elementwise tail: bf16 when the I/O dtype is bf16 (v6e/v7x bf16-native VALU),
    # f32 otherwise.
    ct = jnp.bfloat16 if o_ref.dtype == jnp.bfloat16 else jnp.float32
    y = y.astype(ct)

    proj = jnp.maximum(y[:, :l_out], 0.0)            # relu
    # sigmoid(z) == 0.5 * tanh(0.5 * z) + 0.5  -> transcendental on the EUP slot.
    gate = 0.5 * jnp.tanh(0.5 * y[:, l_out:]) + 0.5

    xf = x.astype(ct)
    if l_out != l_in:
        # P=1 fallback with feature padding: extend x with zero columns in VMEM.
        xf = jnp.concatenate(
            [xf, jnp.zeros((xf.shape[0], l_out - l_in), dtype=ct)], axis=-1)

    # out = proj*gate + (1-gate)*x  ==  gate*(proj - x) + x   (one fewer VPU mul)
    o_ref[...] = (gate * (proj - xf) + xf).astype(o_ref.dtype)


def prepare_highway_params(wproj, bproj, wgate, bgate, *, dtype=None):
    """Build the fused / block-diagonal weights ONCE per model (hoist out of hot path).

    wproj/wgate: (E, E) PyTorch-style (y = x @ W.T + b);  bproj/bgate: (E,).
    Returns (w_fused, b_fused, P, E, L_in, L_out).
    """
    E = wproj.shape[0]
    if dtype is None:
        dtype = wproj.dtype

    if E < 128 and 128 % E == 0:
        # Lane-dense fast path: pack P rows per 128-lane row, block-diagonal weights.
        P = 128 // E
        L_in = L_out = 128
        eye = jnp.eye(P, dtype=wproj.dtype)
        wp = jnp.kron(eye, wproj.T)                  # (128, 128) block-diag
        wg = jnp.kron(eye, wgate.T)
        bp = jnp.tile(bproj, P)
        bg = jnp.tile(bgate, P)
    else:
        # P = 1 fallback: zero-pad the output feature dim to a multiple of 128 so the
        # output stores stay lane-dense (unmasked vst).
        P = 1
        L_in = E
        L_out = _round_up(E, 128)
        pad = L_out - E
        wp = jnp.pad(wproj.T, ((0, 0), (0, pad)))
        wg = jnp.pad(wgate.T, ((0, 0), (0, pad)))
        bp = jnp.pad(bproj, (0, pad))
        bg = jnp.pad(bgate, (0, pad))

    w_fused = jnp.concatenate([wp, wg], axis=1).astype(dtype)           # (L_in, 2*L_out)
    b_fused = jnp.concatenate([bp, bg]).reshape(1, 2 * L_out).astype(jnp.float32)
    return w_fused, b_fused, P, E, L_in, L_out


def highway_apply(x, params, *, tm=2048):
    """Apply the highway layer.  x: (..., E).  params from prepare_highway_params."""
    w_fused, b_fused, P, E, L_in, L_out = params
    orig_shape = x.shape
    assert orig_shape[-1] == E
    dtype = x.dtype

    x2d = x.reshape(-1, E)
    N = x2d.shape[0]

    # ---- lane-dense row packing (only pads the <= P-1 rows needed, if any) -----
    if P > 1:
        n_pp = _round_up(N, P)
        if n_pp != N:
            x2d = jnp.pad(x2d, ((0, n_pp - N), (0, 0)))
        xp = x2d.reshape(n_pp // P, L_in)            # free row-major view
    else:
        n_pp = N
        xp = x2d
    np_rows = xp.shape[0]

    # ---- row tiling: no wrapper-side padding; Pallas masks the ragged last tile ----
    sub = _sublane(dtype)
    tm = max(sub, _round_up(tm, sub))
    tm_eff = min(tm, _round_up(np_rows, sub))
    # Ensure >= 2 row tiles when there is enough work so v7x megacore can split them.
    if pl.cdiv(np_rows, tm_eff) < 2 and np_rows >= 512:
        tm_eff = _round_up(pl.cdiv(np_rows, 2), sub)
    if tm_eff >= np_rows:
        tm_eff = np_rows                             # single full-extent block
    grid = (pl.cdiv(np_rows, tm_eff),)

    out = pl.pallas_call(
        highway_kernel,
        out_shape=jax.ShapeDtypeStruct((np_rows, L_out), dtype),
        grid_spec=pltpu.PrefetchScalarGridSpec(
            num_scalar_prefetch=0,
            grid=grid,
            in_specs=[
                pl.BlockSpec((tm_eff, L_in), lambda i: (i, 0)),       # x tile (pipelined)
                pl.BlockSpec((L_in, 2 * L_out), lambda i: (0, 0)),    # fused weight (resident)
                pl.BlockSpec((1, 2 * L_out), lambda i: (0, 0)),       # fused bias (resident)
            ],
            out_specs=pl.BlockSpec((tm_eff, L_out), lambda i: (i, 0)),
        ),
        compiler_params=pltpu.CompilerParams(
            dimension_semantics=("parallel",),
            vmem_limit_bytes=48 * 1024 * 1024,       # > 16/32 MiB scoped defaults, < 64 MiB v7x physical
        ),
    )(xp, w_fused, b_fused)

    # ---- unpack (reshapes are free; slices only happen when padding was needed) ----
    if P > 1:
        out = out.reshape(n_pp, E)
        if n_pp != N:
            out = out[:N]
    else:
        if L_out != E:
            out = out[:, :E]
    return out.reshape(orig_shape)


def highway_forward(x, wproj, bproj, wgate, bgate, *, tm=2048):
    """Convenience one-shot wrapper. In production, hoist prepare_highway_params."""
    params = prepare_highway_params(wproj, bproj, wgate, bgate, dtype=x.dtype)
    return highway_apply(x, params, tm=tm)


def highway_reference(x, wproj, bproj, wgate, bgate):
    proj = jnp.maximum(x @ wproj.T + bproj, 0.0)
    gate = jax.nn.sigmoid(x @ wgate.T + bgate)
    return proj * gate + (1.0 - gate) * x


if __name__ == "__main__":
    batch, seq, embed_size = 2, 8, 32
    key = jax.random.PRNGKey(0)
    k_x, k_wp, k_bp, k_wg, k_bg = jax.random.split(key, 5)

    # conv_out from the CNN char-embedder: shape (batch, seq, embed_size)
    x = jax.random.normal(k_x, (batch, seq, embed_size), dtype=jnp.float32)

    # Deterministic synthetic parameters (nn.Linear(embed_size, embed_size))
    bound = 1.0 / jnp.sqrt(embed_size)
    wproj = jax.random.uniform(k_wp, (embed_size, embed_size),
                               minval=-bound, maxval=bound, dtype=jnp.float32)
    bproj = jax.random.uniform(k_bp, (embed_size,),
                               minval=-bound, maxval=bound, dtype=jnp.float32)
    wgate = jax.random.uniform(k_wg, (embed_size, embed_size),
                               minval=-bound, maxval=bound, dtype=jnp.float32)
    bgate = jax.random.uniform(k_bg, (embed_size,),
                               minval=-bound, maxval=bound, dtype=jnp.float32)

    # Hoisted weight prep (once per model), then apply.
    params = prepare_highway_params(wproj, bproj, wgate, bgate, dtype=x.dtype)
    out = highway_apply(x, params)
    out = jax.block_until_ready(out)

    ref = highway_reference(x, wproj, bproj, wgate, bgate)
    assert out.shape == x.shape
    assert jnp.allclose(out, ref, atol=1e-5, rtol=1e-5)

    print("KERNEL_OK")
</pallas_src>

<mosaic_0001>
module attributes {stable_mosaic.version = 11 : i64} {
  func.func @highway_kernel(%arg0: i32, %arg1: memref<4x128xf32, #tpu.memory_space<vmem>>, %arg2: memref<128x256xf32, #tpu.memory_space<vmem>>, %arg3: memref<1x256xf32, #tpu.memory_space<vmem>>, %arg4: memref<4x128xf32, #tpu.memory_space<vmem>>) attributes {dimension_semantics = [#tpu.dimension_semantics<parallel>], iteration_bounds = array<i64: 1>, scalar_prefetch = 0 : i64, scratch_operands = 0 : i64, tpu.core_type = #tpu.core_type<tc>, window_params = [{transform_indices = @transform_0, window_bounds = array<i64: 4, 128>}, {pipeline_mode = #tpu.pipeline_mode<synchronous>, transform_indices = @transform_1, window_bounds = array<i64: 128, 256>}, {pipeline_mode = #tpu.pipeline_mode<synchronous>, transform_indices = @transform_2, window_bounds = array<i64: 1, 256>}, {transform_indices = @transform_3, window_bounds = array<i64: 4, 128>}]} {
    %c0 = arith.constant 0 : index
    %c0_0 = arith.constant 0 : index
    %0 = vector.load %arg1[%c0, %c0_0] : memref<4x128xf32, #tpu.memory_space<vmem>>, vector<4x128xf32>
    %c0_1 = arith.constant 0 : index
    %c0_2 = arith.constant 0 : index
    %1 = vector.load %arg2[%c0_1, %c0_2] : memref<128x256xf32, #tpu.memory_space<vmem>>, vector<128x256xf32>
    %cst = arith.constant dense<0.000000e+00> : vector<4x256xf32>
    %2 = tpu.matmul %0, %1, %cst {dimension_numbers = #tpu.dot_dimension_numbers<[1], [0], [0], [1], [0, 0, 1, 1], [], []>} : vector<4x128xf32>, vector<128x256xf32>, vector<4x256xf32> -> vector<4x256xf32>
    %c0_3 = arith.constant 0 : index
    %c0_4 = arith.constant 0 : index
    %3 = vector.load %arg3[%c0_3, %c0_4] : memref<1x256xf32, #tpu.memory_space<vmem>>, vector<1x256xf32>
    %4 = vector.broadcast %3 : vector<1x256xf32> to vector<4x256xf32>
    %5 = arith.addf %2, %4 : vector<4x256xf32>
    %6 = vector.extract_strided_slice %5 {offsets = [0, 0], sizes = [4, 128], strides = [1, 1]} : vector<4x256xf32> to vector<4x128xf32>
    %cst_5 = arith.constant 0.000000e+00 : f32
    %7 = vector.broadcast %cst_5 : f32 to vector<4x128xf32>
    %8 = arith.maximumf %6, %7 : vector<4x128xf32>
    %9 = vector.extract_strided_slice %5 {offsets = [0, 128], sizes = [4, 128], strides = [1, 1]} : vector<4x256xf32> to vector<4x128xf32>
    %cst_6 = arith.constant 5.000000e-01 : f32
    %10 = vector.broadcast %cst_6 : f32 to vector<4x128xf32>
    %11 = arith.mulf %10, %9 : vector<4x128xf32>
    %12 = math.tanh %11 : vector<4x128xf32>
    %cst_7 = arith.constant 5.000000e-01 : f32
    %13 = vector.broadcast %cst_7 : f32 to vector<4x128xf32>
    %14 = arith.mulf %13, %12 : vector<4x128xf32>
    %cst_8 = arith.constant 5.000000e-01 : f32
    %15 = vector.broadcast %cst_8 : f32 to vector<4x128xf32>
    %16 = arith.addf %14, %15 : vector<4x128xf32>
    %17 = arith.subf %8, %0 : vector<4x128xf32>
    %18 = arith.mulf %16, %17 : vector<4x128xf32>
    %19 = arith.addf %18, %0 : vector<4x128xf32>
    %c0_9 = arith.constant 0 : index
    %c0_10 = arith.constant 0 : index
    %20 = vector.load %arg4[%c0_9, %c0_10] : memref<4x128xf32, #tpu.memory_space<vmem>>, vector<4x128xf32>
    tpu.vector_store %arg4[%c0_9, %c0_10], %19 {strides = array<i32>} : memref<4x128xf32, #tpu.memory_space<vmem>>, vector<4x128xf32>,
    return
  }
  func.func @transform_0(%arg0: i32) -> (i32, i32) {
    %c0_i32 = arith.constant 0 : i32
    %c0_i32_0 = arith.constant 0 : i32
    return %arg0, %c0_i32 : i32, i32
  }
  func.func @transform_1(%arg0: i32) -> (i32, i32) {
    %c0_i32 = arith.constant 0 : i32
    %c0_i32_0 = arith.constant 0 : i32
    %c0_i32_1 = arith.constant 0 : i32
    return %c0_i32, %c0_i32_0 : i32, i32
  }
  func.func @transform_2(%arg0: i32) -> (i32, i32) {
    %c0_i32 = arith.constant 0 : i32
    %c0_i32_0 = arith.constant 0 : i32
    %c0_i32_1 = arith.constant 0 : i32
    return %c0_i32, %c0_i32_0 : i32, i32
  }
  func.func @transform_3(%arg0: i32) -> (i32, i32) {
    %c0_i32 = arith.constant 0 : i32
    %c0_i32_0 = arith.constant 0 : i32
    return %arg0, %c0_i32 : i32, i32
  }
}

</mosaic_0001>

<bundles_post_ra>
// kernel: tpu_custom_call.1
= control target key start
LH: loop header
LB: loop body
LE: loop exit
PB: predicated region body
PF: predicated region fallthrough
CT: control target
= control target key end

     0   :  { %8 = vsyncpa [#allocation3], 0  ;;  %s312_s0 = inlined_call_operand.hbm [shape: f32[4,128], index: 0, kind: input, shape index: {}]   ;;  %s313_s1 = inlined_call_operand.hbm [shape: f32[128,256], index: 1, kind: input, shape index: {}]   ;;  %s314_s2 = inlined_call_operand.hbm [shape: f32[1,256], index: 2, kind: input, shape index: {}]   ;;  %s315_s3 = inlined_call_operand.hbm [shape: f32[4,128], index: 3, kind: output, shape index: {}]  }
   0x1   :  { %9 = vsyncpa [#allocation6], 0  ;;  %s26_s14 = sshll.u32 %s313_s1, 4  ;;  %s27_s14 = int_to_ptr.hbm [resolvable:$true] %s26_s14 }
   0x2   :  { %10 = vsyncpa [#allocation4], 0  ;;  %s274_s15 = smov [#allocation5]   ;;  %s16_s19 = sshll.u32 %s312_s0, 4  ;;  %s17_s19 = int_to_ptr.hbm [resolvable:$true] %s16_s19 }
   0x3   :  { %s28_s16 = sshll.u32 %s274_s15, 4  ;;  %s275_s20 = smov 256   ;;  %s29_s16 = int_to_ptr.vmem [resolvable:$true] %s28_s16 }
   0x4   :  { %s276_s21 = smov 16   ;;  %s277_s22 = smov [#allocation2]  }
   0x5   :  { %34 = dma.hbm_to_vmem [thread:$0]  %s27_s14, 4096, %s29_s16, [#allocation6], %s275_s20, %s275_s20, %s276_s21  }
   0x6   :  { %s18_s23 = sshll.u32 %s277_s22, 4  ;;  %s40_s26 = sshll.u32 %s314_s2, 4  ;;  %s19_s23 = int_to_ptr.vmem [resolvable:$true] %s18_s23  ;;  %s41_s26 = int_to_ptr.hbm [resolvable:$true] %s40_s26 }
   0x7   :  { %21 = dma.hbm_to_vmem [thread:$0]  %s17_s19, 64, %s19_s23, [#allocation3]  }
   0x8   :  { %s278_s1 = smov [#allocation7]  }
   0x9   :  { %s42_s27 = sshll.u32 %s278_s1, 4  ;;  %s43_s27 = int_to_ptr.vmem [resolvable:$true] %s42_s27 }
   0xa   :  { %45 = dma.hbm_to_vmem [thread:$0]  %s41_s26, 32, %s43_s27, [#allocation6]  }
   0xb   :  { %268 = dma.done.wait [#allocation3], 64  }
   0xc   :  { %269 = vsyncadd [#allocation3], 4294967232 }
   0xd   :  { %270 = dma.done.wait [#allocation6], 4128  }
   0xe   :  { %271 = vsyncadd [#allocation6], 4294963168  ;;  %v90_v0 = vld [vmem:[#allocation5 + $0xf8] sm:$0xff]  ;;  %v88_v1 = vld [vmem:[#allocation5 + $0xe8] sm:$0xff]  ;;  %s279_s0 = smov [#allocation8]   ;;  %s153_s30 = sshll.u32 %s315_s3, 4  ;;  %s154_s30 = int_to_ptr.hbm [resolvable:$true] %s153_s30 }
   0xf   :  { %117 = vmatpush.msra.mxu1 %v90_v0  ;;  %v89_v2 = vld [vmem:[#allocation5 + $0xf0] sm:$0xff]  ;;  %v86_v3 = vld [vmem:[#allocation5 + $0xd8] sm:$0xff]  ;;  %v87_v4 = vld [vmem:[#allocation5 + $0xe0] sm:$0xff]  ;;  %s151_s2 = sshll.u32 %s279_s0, 4  ;;  %s152_s2 = int_to_ptr.vmem [resolvable:$true] %s151_s2 }
  0x10   :  { %97 = vmatpush.msra.mxu0 %v89_v2  ;;  %v85_v5 = vld [vmem:[#allocation5 + $0xd0] sm:$0xff]  ;;  %v84_v6 = vld [vmem:[#allocation5 + $0xc8] sm:$0xff]  ;;  %v83_v7 = vld [vmem:[#allocation5 + $0xc0] sm:$0xff] }
  0x11   :  { %118 = vmatpush.msra.mxu1 %v88_v1  ;;  %v82_v8 = vld [vmem:[#allocation5 + $0xb8] sm:$0xff]  ;;  %v81_v9 = vld [vmem:[#allocation5 + $0xb0] sm:$0xff]  ;;  %v80_v10 = vld [vmem:[#allocation5 + $0xa8] sm:$0xff] }
  0x12   :  { %98 = vmatpush.msra.mxu0 %v87_v4  ;;  %v79_v11 = vld [vmem:[#allocation5 + $0xa0] sm:$0xff]  ;;  %v78_v12 = vld [vmem:[#allocation5 + $0x98] sm:$0xff]  ;;  %v77_v13 = vld [vmem:[#allocation5 + $0x90] sm:$0xff] }
  0x13   :  { %119 = vmatpush.msra.mxu1 %v86_v3  ;;  %v76_v14 = vld [vmem:[#allocation5 + $0x88] sm:$0xff]  ;;  %v75_v15 = vld [vmem:[#allocation5 + $0x80] sm:$0xff]  ;;  %v74_v16 = vld [vmem:[#allocation5 + $0x78] sm:$0xff] }
  0x14   :  { %99 = vmatpush.msra.mxu0 %v85_v5  ;;  %v73_v17 = vld [vmem:[#allocation5 + $0x70] sm:$0xff]  ;;  %v72_v18 = vld [vmem:[#allocation5 + $0x68] sm:$0xff]  ;;  %v71_v19 = vld [vmem:[#allocation5 + $0x60] sm:$0xff] }
  0x15   :  { %120 = vmatpush.msra.mxu1 %v84_v6  ;;  %v70_v20 = vld [vmem:[#allocation5 + $0x58] sm:$0xff]  ;;  %v69_v21 = vld [vmem:[#allocation5 + $0x50] sm:$0xff]  ;;  %v68_v22 = vld [vmem:[#allocation5 + $0x48] sm:$0xff] }
  0x16   :  { %100 = vmatpush.msra.mxu0 %v83_v7  ;;  %v67_v23 = vld [vmem:[#allocation5 + $0x40] sm:$0xff]  ;;  %v66_v24 = vld [vmem:[#allocation5 + $0x38] sm:$0xff]  ;;  %v65_v25 = vld [vmem:[#allocation5 + $0x30] sm:$0xff] }
  0x17   :  { %121 = vmatpush.msra.mxu1 %v82_v8  ;;  %v64_v26 = vld [vmem:[#allocation5 + $0x28] sm:$0xff]  ;;  %v63_v27 = vld [vmem:[#allocation5 + $0x20] sm:$0xff]  ;;  %v62_v28 = vld [vmem:[#allocation5 + $0x18] sm:$0xff] }
  0x18   :  { %101 = vmatpush.msra.mxu0 %v81_v9  ;;  %v61_v29 = vld [vmem:[#allocation5 + $0x10] sm:$0xff]  ;;  %v60_v30 = vld [vmem:[#allocation5 + $0x8] sm:$0xff]  ;;  %v58_v31 = vld [vmem:[#allocation2] sm:$0xf] }
  0x19   :  { %122 = vmatpush.msra.mxu1 %v80_v10  ;;  %v59_v32 = vld [vmem:[#allocation5] sm:$0xff] }
  0x1a   :  { %102 = vmatpush.msra.mxu0 %v79_v11  ;;  %v91_v33 = vld [vmem:[#allocation7] sm:$0x3] }
  0x1b   :  { %123 = vmatpush.msra.mxu1 %v78_v12  ;;  %v94_v34 = vperm.slane %v91_v33, 1  ;;  %v93_v36 = vperm.slane %v91_v33, 0 }
  0x1c   :  { %103 = vmatpush.msra.mxu0 %v77_v13 }
  0x1d   :  { %124 = vmatpush.msra.mxu1 %v76_v14 }
  0x1e   :  { %104 = vmatpush.msra.mxu0 %v75_v15 }
  0x1f   :  { %125 = vmatpush.msra.mxu1 %v74_v16 }
  0x20   :  { %105 = vmatpush.msra.mxu0 %v73_v17 }
  0x21   :  { %126 = vmatpush.msra.mxu1 %v72_v18 }
  0x22   :  { %106 = vmatpush.msra.mxu0 %v71_v19 }
  0x23   :  { %127 = vmatpush.msra.mxu1 %v70_v20 }
  0x24   :  { %107 = vmatpush.msra.mxu0 %v69_v21 }
  0x25   :  { %128 = vmatpush.msra.mxu1 %v68_v22 }
  0x26   :  { %108 = vmatpush.msra.mxu0 %v67_v23 }
  0x27   :  { %129 = vmatpush.msra.mxu1 %v66_v24 }
  0x28   :  { %109 = vmatpush.msra.mxu0 %v65_v25 }
  0x29   :  { %130 = vmatpush.msra.mxu1 %v64_v26 }
  0x2a   :  { %110 = vmatpush.msra.mxu0 %v63_v27 }
  0x2b   :  { %131 = vmatpush.msra.mxu1 %v62_v28 }
  0x2c   :  { %111 = vmatpush.msra.mxu0 %v61_v29 }
  0x2d   :  { %132 = vmatpush.msra.mxu1 %v60_v30 }
  0x2e   :  { %133 = vmatmul.f32.vlgmr.msra.gmra.mxu1 %v58_v31  ;;  %112 = vmatpush.msra.mxu0 %v59_v32 }
  0x2f   :  { %113 = vmatmul.f32.vlgmr.msra.gmra.mxu0 %v58_v31 }
  0xab   :  { %v134_v35 = vpop.f32.mrf.mxu1 }
  0xac   :  { %v135_v37 = vadd.f32 %v134_v35, %v94_v34  ;;  %v114_v38 = vpop.f32.mrf.mxu0 }
  0xad   :  { %v115_v40 = vadd.f32 %v114_v38, %v93_v36 }
  0xae   :  { %v138_v39 = vmul.f32 0.5, %v135_v37 }
  0xaf   :  { %v137_v41 = vmax.f32 %v115_v40, 0.0 }
  0xb0   :  { %170 = vtanh.f32 %v138_v39 }
  0xb1   :  { %v142_v44 = vsub.f32 %v137_v41, %v58_v31 }
  0xb6   :  { %v171_v42 = vpop.eup %170 }
  0xb7   :  { %v140_v43 = vmul.f32 0.5, %v171_v42 }
  0xb9   :  { %v141_v45 = vadd.f32 0.5, %v140_v43 }
  0xbb   :  { %v143_v46 = vmul.f32 %v142_v44, %v141_v45 }
  0xbd   :  { %v144_v47 = vadd.f32 %v143_v46, %v58_v31 }
  0xbf   :  { %145 = vst [vmem:[#allocation8] sm:$0xf] %v144_v47 }
  0xc0   :  { %156 = dma.vmem_to_hbm [thread:$0]  %s152_s2, 64, %s154_s30, [#allocation4]  }
  0xc1   :  { %272 = dma.done.wait [#allocation4], 64  }
  0xc2   :  { %273 = vsyncadd [#allocation4], 4294967232 }
  0xc3   :  { %161 = vsyncpa [#allocation3], 1 }
  0xc4   :  { %162 = vsyncpa [#allocation6], 1 }
  0xc5   :  { %163 = vsyncpa [#allocation4], 1 }

</bundles_post_ra>
